<compile_context>
chip_gen: v7x
topology: tpu7x:2x2x1
jax: 0.10.0
libtpu: 0.0.40
codegen_flags: <defaults>
</compile_context>

<pallas_src>
import jax
import jax.numpy as jnp
from jax.experimental import pallas as pl
from jax.experimental.pallas import tpu as pltpu

EPS = 1e-5  # torch.nn.BatchNorm2d default
_VMEM_LIMIT = 32 * 1024 * 1024


@jax.jit
def batchnorm2d(x, gamma, beta):
    """BatchNorm2d forward (training mode: batch statistics), NCHW input."""
    N, C, H, W = x.shape
    HW = H * W
    L = N * HW
    inv_l = 1.0 / float(L)

    # Free, contiguous reshape: flatten the spatial dims onto the lane axis.
    x3 = x.reshape(N, C, HW)
    g3 = gamma.astype(jnp.float32).reshape(1, C, 1)
    b3 = beta.astype(jnp.float32).reshape(1, C, 1)

    def bn_kernel(x_ref, gamma_ref, beta_ref, o_ref):
        xt = x_ref[...].astype(jnp.float32)                     # (N, C, HW)

        # Per-channel mean: lane reduction, then reduce across the batch dim.
        s_lane = jnp.sum(xt, axis=2, keepdims=True)             # (N, C, 1)
        mean = jnp.sum(s_lane, axis=0, keepdims=True) * inv_l   # (1, C, 1)

        # Two-pass (shifted) variance — avoids E[x^2]-E[x]^2 cancellation.
        d = xt - mean                                           # (N, C, HW)
        v_lane = jnp.sum(d * d, axis=2, keepdims=True)          # (N, C, 1)
        var = jnp.sum(v_lane, axis=0, keepdims=True) * inv_l    # (1, C, 1)

        inv = jax.lax.rsqrt(var + EPS)                          # once per channel
        scale = gamma_ref[...] * inv                            # (1, C, 1)
        o_ref[...] = (d * scale + beta_ref[...]).astype(o_ref.dtype)

    numel = N * C * HW
    cost = pl.CostEstimate(
        flops=6 * numel,
        transcendentals=C,
        bytes_accessed=2 * numel * x.dtype.itemsize + 2 * C * 4,
    )

    vmem_spec = pl.BlockSpec(memory_space=pltpu.MemorySpace.VMEM)

    out3 = pl.pallas_call(
        bn_kernel,
        out_shape=jax.ShapeDtypeStruct((N, C, HW), x.dtype),
        in_specs=[vmem_spec, vmem_spec, vmem_spec],
        out_specs=vmem_spec,
        cost_estimate=cost,
        compiler_params=pltpu.CompilerParams(vmem_limit_bytes=_VMEM_LIMIT),
    )(x3, g3, b3)

    return out3.reshape(N, C, H, W)


if __name__ == "__main__":
    key = jax.random.PRNGKey(0)
    # Matches the PyTorch spec: x1 = torch.randn(1, 2, 5, 5), BatchNorm2d(2).
    N, C, H, W = 1, 2, 5, 5
    x = jax.random.normal(key, (N, C, H, W), dtype=jnp.float32)

    # nn.BatchNorm2d default affine init.
    gamma = jnp.ones((C,), dtype=jnp.float32)
    beta = jnp.zeros((C,), dtype=jnp.float32)

    out = batchnorm2d(x, gamma, beta)
    out = jax.block_until_ready(out)

    # Pure-JAX reference (training-mode batchnorm, biased variance).
    mean = jnp.mean(x, axis=(0, 2, 3), keepdims=True)
    var = jnp.mean((x - mean) ** 2, axis=(0, 2, 3), keepdims=True)
    ref = (x - mean) / jnp.sqrt(var + EPS) * gamma.reshape(1, C, 1, 1) \
        + beta.reshape(1, C, 1, 1)

    assert out.shape == (N, C, H, W)
    assert jnp.max(jnp.abs(out - ref)) < 1e-4

    print("KERNEL_OK")
</pallas_src>

<mosaic_0001>
module attributes {stable_mosaic.version = 11 : i64} {
  func.func @bn_kernel(%arg0: memref<1x2x25xf32, #tpu.memory_space<vmem>>, %arg1: memref<1x2x1xf32, #tpu.memory_space<vmem>>, %arg2: memref<1x2x1xf32, #tpu.memory_space<vmem>>, %arg3: memref<1x2x25xf32, #tpu.memory_space<vmem>>) attributes {dimension_semantics = [], scalar_prefetch = 0 : i64, scratch_operands = 0 : i64, tpu.core_type = #tpu.core_type<tc>} {
    %c0 = arith.constant 0 : index
    %c0_0 = arith.constant 0 : index
    %c0_1 = arith.constant 0 : index
    %0 = vector.load %arg0[%c0, %c0_0, %c0_1] : memref<1x2x25xf32, #tpu.memory_space<vmem>>, vector<1x2x25xf32>
    %cst = arith.constant dense<0.000000e+00> : vector<1x2xf32>
    %1 = vector.multi_reduction <add>, %0, %cst [2] : vector<1x2x25xf32> to vector<1x2xf32>
    %2 = vector.shape_cast %1 : vector<1x2xf32> to vector<1x2x1xf32>
    %cst_2 = arith.constant dense<0.000000e+00> : vector<2x1xf32>
    %3 = vector.multi_reduction <add>, %2, %cst_2 [0] : vector<1x2x1xf32> to vector<2x1xf32>
    %4 = vector.shape_cast %3 : vector<2x1xf32> to vector<1x2x1xf32>
    %cst_3 = arith.constant 4.000000e-02 : f32
    %5 = vector.broadcast %cst_3 : f32 to vector<1x2x1xf32>
    %6 = arith.mulf %4, %5 : vector<1x2x1xf32>
    %7 = vector.broadcast %6 : vector<1x2x1xf32> to vector<1x2x25xf32>
    %8 = arith.subf %0, %7 : vector<1x2x25xf32>
    %9 = arith.mulf %8, %8 : vector<1x2x25xf32>
    %cst_4 = arith.constant dense<0.000000e+00> : vector<1x2xf32>
    %10 = vector.multi_reduction <add>, %9, %cst_4 [2] : vector<1x2x25xf32> to vector<1x2xf32>
    %11 = vector.shape_cast %10 : vector<1x2xf32> to vector<1x2x1xf32>
    %cst_5 = arith.constant dense<0.000000e+00> : vector<2x1xf32>
    %12 = vector.multi_reduction <add>, %11, %cst_5 [0] : vector<1x2x1xf32> to vector<2x1xf32>
    %13 = vector.shape_cast %12 : vector<2x1xf32> to vector<1x2x1xf32>
    %cst_6 = arith.constant 4.000000e-02 : f32
    %14 = vector.broadcast %cst_6 : f32 to vector<1x2x1xf32>
    %15 = arith.mulf %13, %14 : vector<1x2x1xf32>
    %cst_7 = arith.constant 9.99999974E-6 : f32
    %16 = vector.broadcast %cst_7 : f32 to vector<1x2x1xf32>
    %17 = arith.addf %15, %16 : vector<1x2x1xf32>
    %18 = math.rsqrt %17 : vector<1x2x1xf32>
    %c0_8 = arith.constant 0 : index
    %c0_9 = arith.constant 0 : index
    %c0_10 = arith.constant 0 : index
    %19 = vector.load %arg1[%c0_8, %c0_9, %c0_10] : memref<1x2x1xf32, #tpu.memory_space<vmem>>, vector<1x2x1xf32>
    %20 = arith.mulf %19, %18 : vector<1x2x1xf32>
    %21 = vector.broadcast %20 : vector<1x2x1xf32> to vector<1x2x25xf32>
    %22 = arith.mulf %8, %21 : vector<1x2x25xf32>
    %c0_11 = arith.constant 0 : index
    %c0_12 = arith.constant 0 : index
    %c0_13 = arith.constant 0 : index
    %23 = vector.load %arg2[%c0_11, %c0_12, %c0_13] : memref<1x2x1xf32, #tpu.memory_space<vmem>>, vector<1x2x1xf32>
    %24 = vector.broadcast %23 : vector<1x2x1xf32> to vector<1x2x25xf32>
    %25 = arith.addf %22, %24 : vector<1x2x25xf32>
    %c0_14 = arith.constant 0 : index
    %c0_15 = arith.constant 0 : index
    %c0_16 = arith.constant 0 : index
    %26 = vector.load %arg3[%c0_14, %c0_15, %c0_16] : memref<1x2x25xf32, #tpu.memory_space<vmem>>, vector<1x2x25xf32>
    tpu.vector_store %arg3[%c0_14, %c0_15, %c0_16], %25 {strides = array<i32>} : memref<1x2x25xf32, #tpu.memory_space<vmem>>, vector<1x2x25xf32>,
    return
  }
}

</mosaic_0001>

<bundles_post_ra>
// kernel: batchnorm2d.1
= control target key start
LH: loop header
LB: loop body
LE: loop exit
PB: predicated region body
PF: predicated region fallthrough
CT: control target
= control target key end

     0   :  { %vm15_vm0 = vcmask 197632   ;;  %v55_v7 = vmov 0   ;;  %s91_s0 = inlined_call_operand.vmem [shape: f32[1,2,25], index: 0, kind: input, shape index: {}]   ;;  %s92_s1 = inlined_call_operand.vmem [shape: f32[1,2,1], index: 1, kind: input, shape index: {}]   ;;  %s93_s2 = inlined_call_operand.vmem [shape: f32[1,2,1], index: 2, kind: input, shape index: {}]   ;;  %s94_s3 = inlined_call_operand.vmem [shape: f32[1,2,25], index: 3, kind: output, shape index: {}]  }
   0x1   :  { %v14_v0 = vld [vmem:[%s91_s0] sm:$0x3]  ;;  %51 = vset.pattern.permute.xlu1 %v55_v7  ;;  %52 = vset.pattern.permute.xlu0 %v55_v7 }
   0x2   :  { %v16_v1 = vsel %vm15_vm0, %v14_v0, 0.0  ;;  %v30_v11 = vld [vmem:[%s92_s1] sm:$0x3] }
   0x3   :  { %17 = vadd.xlane.f32.xlu0 %v16_v1  ;;  %v38_v14 = vld [vmem:[%s93_s2] sm:$0x3] }
  0x90   :  { %v18_v2 = vpop.xlane.xlu0 %17 }
  0x91   :  { %v20_v3 = vmul.f32 0.04, %v18_v2 }
  0x93   :  { %v21_v4 = vsub.f32 %v14_v0, %v20_v3 }
  0x95   :  { %v22_v5 = vmul.f32 %v21_v4, %v21_v4 }
  0x97   :  { %v23_v6 = vsel %vm15_vm0, %v22_v5, 0.0 }
  0x98   :  { %24 = vadd.xlane.f32.xlu0 %v23_v6 }
 0x125   :  { %v25_v8 = vpop.xlane.xlu0 %24 }
 0x126   :  { %v27_v9 = vmul.f32 0.04, %v25_v8 }
 0x128   :  { %v28_v10 = vadd.f32 1e-05, %v27_v9 }
 0x12a   :  { %53 = vrsqrt.f32 %v28_v10 }
 0x134   :  { %v54_v12 = vpop.eup %53 }
 0x135   :  { %v31_v13 = vmul.f32 %v54_v12, %v30_v11 }
 0x137   :  { %34 = vperm.xlu1 %51, %v31_v13  }
 0x13b   :  { %41 = vperm.xlu1 %51, %v38_v14  }
 0x1b6   :  { %v35_v15 = vpop.permute.xlu1 %34 }
 0x1b7   :  { %v37_v16 = vmul.f32 %v35_v15, %v21_v4 }
 0x1ba   :  { %v42_v17 = vpop.permute.xlu1 %41 }
 0x1bb   :  { %v44_v18 = vadd.f32 %v42_v17, %v37_v16 }
 0x1bd   :  { %45 = vst.msk [vmem:[%s94_s3] sm:$0x3] %vm15_vm0, %v44_v18 }

</bundles_post_ra>
